<compile_context>
chip_gen: v5e
topology: v5e:2x2
jax: 0.10.0
libtpu: 0.0.40
codegen_flags: <defaults>
</compile_context>

<pallas_src>
import functools

import jax
import jax.numpy as jnp
from jax.experimental import pallas as pl
from jax.experimental.pallas import tpu as pltpu

LANE = 128                       # lane width: pad all narrow N dims to this
DEFAULT_TILE_M = 1024            # batch-tile cap (multiple of 8)
VMEM_FALLBACK = 64 * 1024 * 1024 # v7x per-TC VMEM = smallest in the fleet


def _round_up(n, m):
    return ((n + m - 1) // m) * m


def _cdiv(a, b):
    return (a + b - 1) // b


# ---------------------------------------------------------------------------
# Kernel
# ---------------------------------------------------------------------------
def dqn_kernel(x_ref, w1_ref, b1_ref, w2_ref, b2_ref, w3_ref, b3_ref, o_ref):
    # x: (TILE_M, F); w1: (F, 128); w2, w3: (128, 128); biases: (1, 128)
    x = x_ref[...]
    h1 = jnp.dot(x, w1_ref[...], preferred_element_type=jnp.float32) + b1_ref[...]
    h1 = jnp.maximum(h1, 0.0)                                        # ReLU
    h2 = jnp.dot(h1, w2_ref[...], preferred_element_type=jnp.float32) + b2_ref[...]
    h2 = jnp.maximum(h2, 0.0)                                        # ReLU
    out = jnp.dot(h2, w3_ref[...], preferred_element_type=jnp.float32) + b3_ref[...]
    o_ref[...] = out.astype(o_ref.dtype)                             # lane-dense store


# ---------------------------------------------------------------------------
# Params (PyTorch nn.Linear default init) + one-time lane padding
# ---------------------------------------------------------------------------
def init_params(key, in_features):
    """U(-1/sqrt(fan_in), 1/sqrt(fan_in)) for both W and b (torch default)."""
    sizes = [(in_features, 24), (24, 32), (32, 2)]
    params = []
    for fan_in, fan_out in sizes:
        kw, kb, key = jax.random.split(key, 3)
        bound = 1.0 / jnp.sqrt(fan_in)
        w = jax.random.uniform(kw, (fan_in, fan_out), jnp.float32, -bound, bound)
        b = jax.random.uniform(kb, (1, fan_out), jnp.float32, -bound, bound)
        params += [w, b]
    return params


def pad_params(params):
    """Zero-pad weight/bias widths to 128 lanes (done once; exact math)."""
    w1, b1, w2, b2, w3, b3 = params
    f_in = w1.shape[0]

    def padw(w, rows, cols):
        return jnp.zeros((rows, cols), w.dtype).at[: w.shape[0], : w.shape[1]].set(w)

    def padb(b, cols):
        return jnp.zeros((1, cols), b.dtype).at[:, : b.shape[1]].set(b)

    return (
        padw(w1, f_in, LANE), padb(b1, LANE),
        padw(w2, LANE, LANE), padb(b2, LANE),
        padw(w3, LANE, LANE), padb(b3, LANE),
    )


# ---------------------------------------------------------------------------
# Spec / tiling helpers
# ---------------------------------------------------------------------------
def _make_const_spec_factory():
    """Constant-index (VMEM-resident) specs for weights/biases.  Request a
    single buffer (they are only fetched once) so the default double-buffer
    copy of the weights is not dead VMEM; fall back on older jax."""
    try:
        pl.BlockSpec((8, LANE), lambda i: (0, 0), pipeline_mode=pl.Buffered(1))

        def make(shape):
            return pl.BlockSpec(shape, lambda i: (0, 0), pipeline_mode=pl.Buffered(1))

        return make, True
    except (TypeError, AttributeError):

        def make(shape):
            return pl.BlockSpec(shape, lambda i: (0, 0))

        return make, False


_CONST_SPEC, _WEIGHTS_SINGLE_BUFFERED = _make_const_spec_factory()


def _vmem_budget_bytes():
    """Usable VMEM budget with headroom below per-TC physical capacity."""
    try:
        cap = int(pltpu.get_tpu_info().vmem_capacity_bytes)
    except Exception:
        cap = VMEM_FALLBACK
    return (cap * 3) // 4


def _resident_weight_bytes(f_in):
    one = 4 * (f_in * LANE + 2 * LANE * LANE + 3 * LANE)
    return one if _WEIGHTS_SINGLE_BUFFERED else 2 * one


def _choose_tile(batch, f_in, tile_m_cap):
    # Per-row VMEM cost: double-buffered x tile + double-buffered out tile (f32).
    per_row = 2 * 4 * f_in + 2 * 4 * LANE
    budget = _vmem_budget_bytes() - _resident_weight_bytes(f_in) - (2 << 20)
    tm_fit = max(8, (max(budget, 0) // per_row) // 8 * 8)
    # Guarantee >= 2 grid steps when the batch allows it, so v7x's second
    # TensorCore gets work under dimension_semantics=("parallel",).
    if batch > 8:
        tm_split = _round_up(_cdiv(batch, 2), 8)
    else:
        tm_split = _round_up(batch, 8)
    return max(8, min(tile_m_cap, tm_fit, tm_split))


# ---------------------------------------------------------------------------
# Forward
# ---------------------------------------------------------------------------
@functools.partial(jax.jit, static_argnames=("tile_m",))
def dqn_forward(x_nchw, padded_params, tile_m=DEFAULT_TILE_M):
    """x_nchw: (B, 3, H, W) float32. Returns (B, 2) float32."""
    B = x_nchw.shape[0]
    x_flat = x_nchw.reshape(B, -1).astype(jnp.float32)  # == torch .flatten(start_dim=1)
    f_in = x_flat.shape[1]

    w1, b1, w2, b2, w3, b3 = padded_params

    tm = _choose_tile(B, f_in, tile_m)
    grid = (_cdiv(B, tm),)  # ragged last tile handled by Pallas: no batch-pad copy

    # TODO(synk): for very large f_in (e.g. Atari 3*84*84 ~ 21k) add a K-axis
    # grid dimension over the feature axis with an f32 accumulator scratch
    # instead of letting tm collapse toward 8.

    vmem_limit = int(
        2 * tm * f_in * 4             # double-buffered x tiles
        + 2 * tm * LANE * 4           # double-buffered out tiles
        + _resident_weight_bytes(f_in)
        + (4 << 20)                   # slack (stack, constants, scheduling)
    )
    vmem_limit = min(vmem_limit, 100 << 20)

    out = pl.pallas_call(
        dqn_kernel,
        out_shape=jax.ShapeDtypeStruct((B, LANE), jnp.float32),
        grid=grid,
        in_specs=[
            # x streams: one (tm, F) tile per grid step.  Default 2-deep
            # pipeline; pl.Buffered(3) is a possible few-% win if DMA latency
            # is exposed — measure before enabling.
            pl.BlockSpec((tm, f_in), lambda i: (i, 0)),
            # Weights/biases: full arrays, constant index map -> VMEM-resident,
            # single-buffered when supported.
            _CONST_SPEC(w1.shape),
            _CONST_SPEC(b1.shape),
            _CONST_SPEC(w2.shape),
            _CONST_SPEC(b2.shape),
            _CONST_SPEC(w3.shape),
            _CONST_SPEC(b3.shape),
        ],
        out_specs=pl.BlockSpec((tm, LANE), lambda i: (i, 0)),
        compiler_params=pltpu.CompilerParams(
            dimension_semantics=("parallel",),
            vmem_limit_bytes=vmem_limit,
        ),
    )(x_flat, w1, b1, w2, b2, w3, b3)

    # Drop lane padding -> (B, 2). Batch dim is exact (no padding was added).
    return out[:, :2]


if __name__ == "__main__":
    key = jax.random.PRNGKey(0)
    B, C, H, W = 2, 3, 16, 16          # module uses 3 channels: H*W*3 input features
    kx, kp = jax.random.split(key)
    x = jax.random.normal(kx, (B, C, H, W), dtype=jnp.float32)

    params = init_params(kp, C * H * W)
    padded = pad_params(params)

    out = dqn_forward(x, padded)
    jax.block_until_ready(out)

    # Sanity check vs plain-JAX reference (unpadded params).
    w1, b1, w2, b2, w3, b3 = params
    xf = x.reshape(B, -1)
    ref = jnp.maximum(xf @ w1 + b1, 0.0)
    ref = jnp.maximum(ref @ w2 + b2, 0.0)
    ref = ref @ w3 + b3
    assert out.shape == (B, 2)
    assert jnp.allclose(out, ref, atol=1e-5, rtol=1e-5)

    print("KERNEL_OK")
</pallas_src>

<mosaic_0001>
module attributes {stable_mosaic.version = 11 : i64} {
  func.func @dqn_kernel(%arg0: i32, %arg1: memref<8x768xf32, #tpu.memory_space<vmem>>, %arg2: memref<768x128xf32, #tpu.memory_space<vmem>>, %arg3: memref<1x128xf32, #tpu.memory_space<vmem>>, %arg4: memref<128x128xf32, #tpu.memory_space<vmem>>, %arg5: memref<1x128xf32, #tpu.memory_space<vmem>>, %arg6: memref<128x128xf32, #tpu.memory_space<vmem>>, %arg7: memref<1x128xf32, #tpu.memory_space<vmem>>, %arg8: memref<8x128xf32, #tpu.memory_space<vmem>>) attributes {dimension_semantics = [#tpu.dimension_semantics<parallel>], iteration_bounds = array<i64: 1>, scalar_prefetch = 0 : i64, scratch_operands = 0 : i64, tpu.core_type = #tpu.core_type<tc>, window_params = [{transform_indices = @transform_0, window_bounds = array<i64: 8, 768>}, {pipeline_mode = #tpu.pipeline_mode<synchronous>, transform_indices = @transform_1, window_bounds = array<i64: 768, 128>}, {pipeline_mode = #tpu.pipeline_mode<synchronous>, transform_indices = @transform_2, window_bounds = array<i64: 1, 128>}, {pipeline_mode = #tpu.pipeline_mode<synchronous>, transform_indices = @transform_3, window_bounds = array<i64: 128, 128>}, {pipeline_mode = #tpu.pipeline_mode<synchronous>, transform_indices = @transform_4, window_bounds = array<i64: 1, 128>}, {pipeline_mode = #tpu.pipeline_mode<synchronous>, transform_indices = @transform_5, window_bounds = array<i64: 128, 128>}, {pipeline_mode = #tpu.pipeline_mode<synchronous>, transform_indices = @transform_6, window_bounds = array<i64: 1, 128>}, {transform_indices = @transform_7, window_bounds = array<i64: 8, 128>}]} {
    %c0 = arith.constant 0 : index
    %c0_0 = arith.constant 0 : index
    %0 = vector.load %arg1[%c0, %c0_0] : memref<8x768xf32, #tpu.memory_space<vmem>>, vector<8x768xf32>
    %c0_1 = arith.constant 0 : index
    %c0_2 = arith.constant 0 : index
    %1 = vector.load %arg2[%c0_1, %c0_2] : memref<768x128xf32, #tpu.memory_space<vmem>>, vector<768x128xf32>
    %cst = arith.constant dense<0.000000e+00> : vector<8x128xf32>
    %2 = tpu.matmul %0, %1, %cst {dimension_numbers = #tpu.dot_dimension_numbers<[1], [0], [0], [1], [0, 0, 1, 1], [], []>} : vector<8x768xf32>, vector<768x128xf32>, vector<8x128xf32> -> vector<8x128xf32>
    %c0_3 = arith.constant 0 : index
    %c0_4 = arith.constant 0 : index
    %3 = vector.load %arg3[%c0_3, %c0_4] : memref<1x128xf32, #tpu.memory_space<vmem>>, vector<1x128xf32>
    %4 = vector.broadcast %3 : vector<1x128xf32> to vector<8x128xf32>
    %5 = arith.addf %2, %4 : vector<8x128xf32>
    %cst_5 = arith.constant 0.000000e+00 : f32
    %6 = vector.broadcast %cst_5 : f32 to vector<8x128xf32>
    %7 = arith.maximumf %5, %6 : vector<8x128xf32>
    %c0_6 = arith.constant 0 : index
    %c0_7 = arith.constant 0 : index
    %8 = vector.load %arg4[%c0_6, %c0_7] : memref<128x128xf32, #tpu.memory_space<vmem>>, vector<128x128xf32>
    %cst_8 = arith.constant dense<0.000000e+00> : vector<8x128xf32>
    %9 = tpu.matmul %7, %8, %cst_8 {dimension_numbers = #tpu.dot_dimension_numbers<[1], [0], [0], [1], [0, 0, 1, 1], [], []>} : vector<8x128xf32>, vector<128x128xf32>, vector<8x128xf32> -> vector<8x128xf32>
    %c0_9 = arith.constant 0 : index
    %c0_10 = arith.constant 0 : index
    %10 = vector.load %arg5[%c0_9, %c0_10] : memref<1x128xf32, #tpu.memory_space<vmem>>, vector<1x128xf32>
    %11 = vector.broadcast %10 : vector<1x128xf32> to vector<8x128xf32>
    %12 = arith.addf %9, %11 : vector<8x128xf32>
    %cst_11 = arith.constant 0.000000e+00 : f32
    %13 = vector.broadcast %cst_11 : f32 to vector<8x128xf32>
    %14 = arith.maximumf %12, %13 : vector<8x128xf32>
    %c0_12 = arith.constant 0 : index
    %c0_13 = arith.constant 0 : index
    %15 = vector.load %arg6[%c0_12, %c0_13] : memref<128x128xf32, #tpu.memory_space<vmem>>, vector<128x128xf32>
    %cst_14 = arith.constant dense<0.000000e+00> : vector<8x128xf32>
    %16 = tpu.matmul %14, %15, %cst_14 {dimension_numbers = #tpu.dot_dimension_numbers<[1], [0], [0], [1], [0, 0, 1, 1], [], []>} : vector<8x128xf32>, vector<128x128xf32>, vector<8x128xf32> -> vector<8x128xf32>
    %c0_15 = arith.constant 0 : index
    %c0_16 = arith.constant 0 : index
    %17 = vector.load %arg7[%c0_15, %c0_16] : memref<1x128xf32, #tpu.memory_space<vmem>>, vector<1x128xf32>
    %18 = vector.broadcast %17 : vector<1x128xf32> to vector<8x128xf32>
    %19 = arith.addf %16, %18 : vector<8x128xf32>
    %c0_17 = arith.constant 0 : index
    %c0_18 = arith.constant 0 : index
    %20 = vector.load %arg8[%c0_17, %c0_18] : memref<8x128xf32, #tpu.memory_space<vmem>>, vector<8x128xf32>
    tpu.vector_store %arg8[%c0_17, %c0_18], %19 {strides = array<i32>} : memref<8x128xf32, #tpu.memory_space<vmem>>, vector<8x128xf32>,
    return
  }
  func.func @transform_0(%arg0: i32) -> (i32, i32) {
    %c0_i32 = arith.constant 0 : i32
    %c0_i32_0 = arith.constant 0 : i32
    return %arg0, %c0_i32 : i32, i32
  }
  func.func @transform_1(%arg0: i32) -> (i32, i32) {
    %c0_i32 = arith.constant 0 : i32
    %c0_i32_0 = arith.constant 0 : i32
    %c0_i32_1 = arith.constant 0 : i32
    return %c0_i32, %c0_i32_0 : i32, i32
  }
  func.func @transform_2(%arg0: i32) -> (i32, i32) {
    %c0_i32 = arith.constant 0 : i32
    %c0_i32_0 = arith.constant 0 : i32
    %c0_i32_1 = arith.constant 0 : i32
    return %c0_i32, %c0_i32_0 : i32, i32
  }
  func.func @transform_3(%arg0: i32) -> (i32, i32) {
    %c0_i32 = arith.constant 0 : i32
    %c0_i32_0 = arith.constant 0 : i32
    %c0_i32_1 = arith.constant 0 : i32
    return %c0_i32, %c0_i32_0 : i32, i32
  }
  func.func @transform_4(%arg0: i32) -> (i32, i32) {
    %c0_i32 = arith.constant 0 : i32
    %c0_i32_0 = arith.constant 0 : i32
    %c0_i32_1 = arith.constant 0 : i32
    return %c0_i32, %c0_i32_0 : i32, i32
  }
  func.func @transform_5(%arg0: i32) -> (i32, i32) {
    %c0_i32 = arith.constant 0 : i32
    %c0_i32_0 = arith.constant 0 : i32
    %c0_i32_1 = arith.constant 0 : i32
    return %c0_i32, %c0_i32_0 : i32, i32
  }
  func.func @transform_6(%arg0: i32) -> (i32, i32) {
    %c0_i32 = arith.constant 0 : i32
    %c0_i32_0 = arith.constant 0 : i32
    %c0_i32_1 = arith.constant 0 : i32
    return %c0_i32, %c0_i32_0 : i32, i32
  }
  func.func @transform_7(%arg0: i32) -> (i32, i32) {
    %c0_i32 = arith.constant 0 : i32
    %c0_i32_0 = arith.constant 0 : i32
    return %arg0, %c0_i32 : i32, i32
  }
}

</mosaic_0001>

<bundles_post_ra>
// kernel: dqn_forward.1
= control target key start
LH: loop header
LB: loop body
LE: loop exit
PB: predicated region body
PF: predicated region fallthrough
CT: control target
= control target key end

     0   :  { %12 = vsyncpa [#allocation3], 0  ;;  %s646_s0 = inlined_call_operand.vmem [shape: f32[2,768], index: 0, kind: input, shape index: {}]   ;;  %s647_s1 = inlined_call_operand.hbm [shape: f32[768,128], index: 1, kind: input, shape index: {}]   ;;  %s648_s2 = inlined_call_operand.vmem [shape: f32[1,128], index: 2, kind: input, shape index: {}]   ;;  %s649_s3 = inlined_call_operand.hbm [shape: f32[128,128], index: 3, kind: input, shape index: {}]   ;;  %s650_s4 = inlined_call_operand.vmem [shape: f32[1,128], index: 4, kind: input, shape index: {}]   ;;  %s651_s5 = inlined_call_operand.hbm [shape: f32[128,128], index: 5, kind: input, shape index: {}]   ;;  %s652_s6 = inlined_call_operand.vmem [shape: f32[1,128], index: 6, kind: input, shape index: {}]   ;;  %s653_s7 = inlined_call_operand.hbm [shape: f32[2,128], index: 7, kind: output, shape index: {}]  }
   0x1   :  { %13 = vsyncpa [#allocation6], 0 }
   0x2   :  { %14 = vsyncpa [#allocation4], 0  ;;  %s36_s26 = sshll.u32 %s649_s3, 4  ;;  %s553_s27 = smov [#allocation5]   ;;  %s37_s26 = int_to_ptr.hbm [resolvable:$true] %s36_s26 }
   0x3   :  { %s38_s28 = sshll.u32 %s553_s27, 4  ;;  %s21_s8 = sshll.u32 %s647_s1, 4  ;;  %s39_s28 = int_to_ptr.vmem [resolvable:$true] %s38_s28  ;;  %s22_s8 = int_to_ptr.hbm [resolvable:$true] %s21_s8 }
   0x4   :  { %s554_s9 = smov 128   ;;  %s555_s10 = smov 8  }
   0x5   :  { %44 = dma.hbm_to_vmem [thread:$0]  %s37_s26, 2048, %s39_s28, [#allocation6], %s554_s9, %s554_s9, %s555_s10  }
   0x6   :  { %s556_s11 = smov [#allocation2]   ;;  %s51_s15 = sshll.u32 %s651_s5, 4  ;;  %s52_s15 = int_to_ptr.hbm [resolvable:$true] %s51_s15 }
   0x7   :  { %s23_s12 = sshll.u32 %s556_s11, 4  ;;  %s557_s3 = smov [#allocation7]   ;;  %s24_s12 = int_to_ptr.vmem [resolvable:$true] %s23_s12 }
   0x8   :  { %29 = dma.hbm_to_vmem [thread:$0]  %s22_s8, 12288, %s24_s12, [#allocation3], %s554_s9, %s554_s9, %s555_s10  }
   0x9   :  { %s53_s16 = sshll.u32 %s557_s3, 4  ;;  %s54_s16 = int_to_ptr.vmem [resolvable:$true] %s53_s16 }
   0xa   :  { %59 = dma.hbm_to_vmem [thread:$0]  %s52_s15, 2048, %s54_s16, [#allocation6], %s554_s9, %s554_s9, %s555_s10  }
   0xb   :  { %547 = dma.done.wait [#allocation3], 12288  }
   0xc   :  { %548 = vsyncadd [#allocation3], 4294955008 }
   0xd   :  { %549 = dma.done.wait [#allocation6], 4096  }
   0xe   :  { %550 = vsyncadd [#allocation6], 4294963200  ;;  %v97_v0 = vld [vmem:[#allocation2 + $0x78] sm:$0xff]  ;;  %v96_v1 = vld [vmem:[#allocation2 + $0x70] sm:$0xff] }
   0xf   :  { %v113_v2 = vld [vmem:[#allocation2 + $0xf8] sm:$0xff]  ;;  %217 = vmatpush.msra.mxu0 %v97_v0  ;;  %v112_v3 = vld [vmem:[#allocation2 + $0xf0] sm:$0xff]  ;;  %v95_v4 = vld [vmem:[#allocation2 + $0x68] sm:$0xff] }
  0x10   :  { %237 = vmatpush.msra.mxu1 %v113_v2  ;;  %v111_v5 = vld [vmem:[#allocation2 + $0xe8] sm:$0xff]  ;;  %v94_v6 = vld [vmem:[#allocation2 + $0x60] sm:$0xff]  ;;  %v93_v8 = vld [vmem:[#allocation2 + $0x58] sm:$0xff] }
  0x11   :  { %218 = vmatpush.msra.mxu0 %v96_v1  ;;  %v110_v7 = vld [vmem:[#allocation2 + $0xe0] sm:$0xff]  ;;  %v109_v9 = vld [vmem:[#allocation2 + $0xd8] sm:$0xff]  ;;  %v92_v10 = vld [vmem:[#allocation2 + $0x50] sm:$0xff] }
  0x12   :  { %238 = vmatpush.msra.mxu1 %v112_v3  ;;  %v129_v11 = vld [vmem:[#allocation2 + $0x178] sm:$0xff]  ;;  %v108_v12 = vld [vmem:[#allocation2 + $0xd0] sm:$0xff]  ;;  %v127_v15 = vld [vmem:[#allocation2 + $0x168] sm:$0xff] }
  0x13   :  { %219 = vmatpush.msra.mxu0 %v95_v4  ;;  %257 = vmatpush.msra.mxu2 %v129_v11  ;;  %v128_v13 = vld [vmem:[#allocation2 + $0x170] sm:$0xff]  ;;  %v145_v14 = vld [vmem:[#allocation2 + $0x1f8] sm:$0xff]  ;;  %v91_v17 = vld [vmem:[#allocation2 + $0x48] sm:$0xff] }
  0x14   :  { %239 = vmatpush.msra.mxu1 %v111_v5  ;;  %v144_v16 = vld [vmem:[#allocation2 + $0x1f0] sm:$0xff]  ;;  %v107_v18 = vld [vmem:[#allocation2 + $0xc8] sm:$0xff]  ;;  %277 = vmatpush.msra.mxu3 %v145_v14  ;;  %v126_v19 = vld [vmem:[#allocation2 + $0x160] sm:$0xff] }
  0x15   :  { %220 = vmatpush.msra.mxu0 %v94_v6  ;;  %258 = vmatpush.msra.mxu2 %v128_v13  ;;  %v143_v20 = vld [vmem:[#allocation2 + $0x1e8] sm:$0xff]  ;;  %v90_v21 = vld [vmem:[#allocation2 + $0x40] sm:$0xff]  ;;  %v125_v23 = vld [vmem:[#allocation2 + $0x158] sm:$0xff] }
  0x16   :  { %240 = vmatpush.msra.mxu1 %v110_v7  ;;  %v106_v22 = vld [vmem:[#allocation2 + $0xc0] sm:$0xff]  ;;  %278 = vmatpush.msra.mxu3 %v144_v16  ;;  %v89_v25 = vld [vmem:[#allocation2 + $0x38] sm:$0xff]  ;;  %v124_v27 = vld [vmem:[#allocation2 + $0x150] sm:$0xff] }
  0x17   :  { %221 = vmatpush.msra.mxu0 %v93_v8  ;;  %259 = vmatpush.msra.mxu2 %v127_v15  ;;  %v142_v24 = vld [vmem:[#allocation2 + $0x1e0] sm:$0xff]  ;;  %v105_v26 = vld [vmem:[#allocation2 + $0xb8] sm:$0xff]  ;;  %v88_v29 = vld [vmem:[#allocation2 + $0x30] sm:$0xff] }
  0x18   :  { %241 = vmatpush.msra.mxu1 %v109_v9  ;;  %279 = vmatpush.msra.mxu3 %v143_v20  ;;  %v141_v28 = vld [vmem:[#allocation2 + $0x1d8] sm:$0xff]  ;;  %v104_v30 = vld [vmem:[#allocation2 + $0xb0] sm:$0xff]  ;;  %v123_v31 = vld [vmem:[#allocation2 + $0x148] sm:$0xff] }
  0x19   :  { %222 = vmatpush.msra.mxu0 %v92_v10  ;;  %260 = vmatpush.msra.mxu2 %v126_v19  ;;  %v140_v32 = vld [vmem:[#allocation2 + $0x1d0] sm:$0xff]  ;;  %v87_v33 = vld [vmem:[#allocation2 + $0x28] sm:$0xff]  ;;  %v122_v35 = vld [vmem:[#allocation2 + $0x140] sm:$0xff] }
  0x1a   :  { %242 = vmatpush.msra.mxu1 %v108_v12  ;;  %280 = vmatpush.msra.mxu3 %v142_v24  ;;  %v103_v34 = vld [vmem:[#allocation2 + $0xa8] sm:$0xff]  ;;  %v86_v37 = vld [vmem:[#allocation2 + $0x20] sm:$0xff]  ;;  %v121_v39 = vld [vmem:[#allocation2 + $0x138] sm:$0xff] }
  0x1b   :  { %223 = vmatpush.msra.mxu0 %v91_v17  ;;  %261 = vmatpush.msra.mxu2 %v125_v23  ;;  %v139_v36 = vld [vmem:[#allocation2 + $0x1c8] sm:$0xff]  ;;  %v102_v38 = vld [vmem:[#allocation2 + $0xa0] sm:$0xff]  ;;  %v85_v41 = vld [vmem:[#allocation2 + $0x18] sm:$0xff] }
  0x1c   :  { %243 = vmatpush.msra.mxu1 %v107_v18  ;;  %281 = vmatpush.msra.mxu3 %v141_v28  ;;  %v138_v40 = vld [vmem:[#allocation2 + $0x1c0] sm:$0xff]  ;;  %v101_v42 = vld [vmem:[#allocation2 + $0x98] sm:$0xff]  ;;  %v120_v43 = vld [vmem:[#allocation2 + $0x130] sm:$0xff] }
  0x1d   :  { %224 = vmatpush.msra.mxu0 %v90_v21  ;;  %262 = vmatpush.msra.mxu2 %v124_v27  ;;  %v137_v44 = vld [vmem:[#allocation2 + $0x1b8] sm:$0xff]  ;;  %v84_v45 = vld [vmem:[#allocation2 + $0x10] sm:$0xff]  ;;  %v119_v47 = vld [vmem:[#allocation2 + $0x128] sm:$0xff] }
  0x1e   :  { %244 = vmatpush.msra.mxu1 %v106_v22  ;;  %282 = vmatpush.msra.mxu3 %v140_v32  ;;  %v100_v46 = vld [vmem:[#allocation2 + $0x90] sm:$0xff]  ;;  %v83_v49 = vld [vmem:[#allocation2 + $0x8] sm:$0xff]  ;;  %v82_v50 = vld [vmem:[#allocation2] sm:$0xff] }
  0x1f   :  { %225 = vmatpush.msra.mxu0 %v89_v25  ;;  %263 = vmatpush.msra.mxu2 %v123_v31  ;;  %v136_v48 = vld [vmem:[#allocation2 + $0x1b0] sm:$0xff]  ;;  %v99_v51 = vld [vmem:[#allocation2 + $0x88] sm:$0xff]  ;;  %v98_v52 = vld [vmem:[#allocation2 + $0x80] sm:$0xff] }
  0x20   :  { %245 = vmatpush.msra.mxu1 %v105_v26  ;;  %283 = vmatpush.msra.mxu3 %v139_v36  ;;  %v118_v53 = vld [vmem:[#allocation2 + $0x120] sm:$0xff]  ;;  %v135_v54 = vld [vmem:[#allocation2 + $0x1a8] sm:$0xff]  ;;  %v74_v55 = vld [vmem:[%s646_s0] sm:$0xff] }
  0x21   :  { %226 = vmatpush.msra.mxu0 %v88_v29  ;;  %264 = vmatpush.msra.mxu2 %v122_v35  ;;  %v76_v56 = vld [vmem:[%s646_s0 + $0xc] sm:$0xff]  ;;  %v78_v57 = vld [vmem:[%s646_s0 + $0x18] sm:$0xff]  ;;  %v161_v58 = vld [vmem:[#allocation2 + $0x278] sm:$0xff]  ;;  %190 = vst [vmem:[#allocation1] ss:$4 sm:$0xff] %v74_v55 }
  0x22   :  { %246 = vmatpush.msra.mxu1 %v104_v30  ;;  %284 = vmatpush.msra.mxu3 %v138_v40  ;;  %v177_v59 = vld [vmem:[#allocation2 + $0x2f8] sm:$0xff]  ;;  %v134_v62 = vld [vmem:[#allocation2 + $0x1a0] sm:$0xff]  ;;  %192 = vst [vmem:[#allocation1 + $0x1] ss:$4 sm:$0xff] %v76_v56  ;;  %v160_v63 = vld [vmem:[#allocation2 + $0x270] sm:$0xff] }
  0x23   :  { %227 = vmatpush.msra.mxu0 %v87_v33  ;;  %265 = vmatpush.msra.mxu2 %v121_v39  ;;  %v80_v60 = vld [vmem:[%s646_s0 + $0x24] sm:$0xff]  ;;  %v159_v0 = vld [vmem:[#allocation2 + $0x268] sm:$0xff]  ;;  %v176_v1 = vld [vmem:[#allocation2 + $0x2f0] sm:$0xff]  ;;  %194 = vst [vmem:[#allocation1 + $0x2] ss:$4 sm:$0xff] %v78_v57 }
  0x24   :  { %247 = vmatpush.msra.mxu1 %v103_v34  ;;  %285 = vmatpush.msra.mxu3 %v137_v44  ;;  %v117_v61 = vld [vmem:[#allocation2 + $0x118] sm:$0xff]  ;;  %v175_v2 = vld [vmem:[#allocation2 + $0x2e8] sm:$0xff]  ;;  %v116_v3 = vld [vmem:[#allocation2 + $0x110] sm:$0xff]  ;;  %196 = vst [vmem:[#allocation1 + $0x3] ss:$4 sm:$0xff] %v80_v60 }
  0x25   :  { %228 = vmatpush.msra.mxu0 %v86_v37  ;;  %266 = vmatpush.msra.mxu2 %v120_v43  ;;  %v133_v4 = vld [vmem:[#allocation2 + $0x198] sm:$0xff]  ;;  %v75_v5 = vld [vmem:[%s646_s0 + $0x8] sm:$0xf]  ;;  %v77_v6 = vld [vmem:[%s646_s0 + $0x14] sm:$0xf] }
  0x26   :  { %248 = vmatpush.msra.mxu1 %v102_v38  ;;  %286 = vmatpush.msra.mxu3 %v136_v48  ;;  %v79_v7 = vld [vmem:[%s646_s0 + $0x20] sm:$0xf]  ;;  %v115_v8 = vld [vmem:[#allocation2 + $0x108] sm:$0xff]  ;;  %v132_v9 = vld [vmem:[#allocation2 + $0x190] sm:$0xff]  ;;  %198 = vst [vmem:[#allocation1 + $0x20] ss:$4 sm:$0xff] %v75_v5 }
  0x27   :  { %229 = vmatpush.msra.mxu0 %v85_v41  ;;  %267 = vmatpush.msra.mxu2 %v119_v47  ;;  %v81_v10 = vld [vmem:[%s646_s0 + $0x2c] sm:$0xf]  ;;  %200 = vst [vmem:[#allocation1 + $0x21] ss:$4 sm:$0xff] %v77_v6  ;;  %v131_v14 = vld [vmem:[#allocation2 + $0x188] sm:$0xff]  ;;  %v157_v15 = vld [vmem:[#allocation2 + $0x258] sm:$0xff] }
  0x28   :  { %249 = vmatpush.msra.mxu1 %v101_v42  ;;  %287 = vmatpush.msra.mxu3 %v135_v54  ;;  %v158_v11 = vld [vmem:[#allocation2 + $0x260] sm:$0xff]  ;;  %202 = vst [vmem:[#allocation1 + $0x22] ss:$4 sm:$0xff] %v79_v7  ;;  %v173_v16 = vld [vmem:[#allocation2 + $0x2d8] sm:$0xff]  ;;  %v156_v18 = vld [vmem:[#allocation2 + $0x250] sm:$0xff] }
  0x29   :  { %230 = vmatpush.msra.mxu0 %v84_v45  ;;  %268 = vmatpush.msra.mxu2 %v118_v53  ;;  %v174_v12 = vld [vmem:[#allocation2 + $0x2e0] sm:$0xff]  ;;  %204 = vst [vmem:[#allocation1 + $0x23] ss:$4 sm:$0xff] %v81_v10  ;;  %v172_v19 = vld [vmem:[#allocation2 + $0x2d0] sm:$0xff]  ;;  %v155_v23 = vld [vmem:[#allocation2 + $0x248] sm:$0xff] }
  0x2a   :  { %250 = vmatpush.msra.mxu1 %v100_v46  ;;  %288 = vmatpush.msra.mxu3 %v134_v62  ;;  %v114_v13 = vld [vmem:[#allocation2 + $0x100] sm:$0xff]  ;;  %v171_v24 = vld [vmem:[#allocation2 + $0x2c8] sm:$0xff]  ;;  %v353_v26 = vld [vmem:[#allocation5 + $0x78] sm:$0xff] }
  0x2b   :  { %231 = vmatpush.msra.mxu0 %v83_v49  ;;  %269 = vmatpush.msra.mxu2 %v117_v61  ;;  %v130_v17 = vld [vmem:[#allocation2 + $0x180] sm:$0xff]  ;;  %v207_v20 = vld.sshfl [vmem:[#allocation1 + $0x10] sm:$0xff pattern:$0x73625140]  ;;  %v352_v29 = vld [vmem:[#allocation5 + $0x70] sm:$0xff] }
  0x2c   :  { %251 = vmatpush.msra.mxu1 %v99_v51  ;;  %289 = vmatpush.msra.mxu3 %v133_v4  ;;  %v205_v21 = vld.sshfl [vmem:[#allocation1] sm:$0xff pattern:$0x73625140]  ;;  %v208_v22 = vld.sshfl [vmem:[#allocation1 + $0x18] sm:$0xff pattern:$0x73625140] }
  0x2d   :  { %232 = vmatpush.msra.mxu0 %v82_v50  ;;  %270 = vmatpush.msra.mxu2 %v116_v3  ;;  %v206_v25 = vld.sshfl [vmem:[#allocation1 + $0x8] sm:$0xff pattern:$0x73625140]  ;;  %v153_v30 = vld [vmem:[#allocation2 + $0x238] sm:$0xff]  ;;  %v351_v32 = vld [vmem:[#allocation5 + $0x68] sm:$0xff] }
  0x2e   :  { %252 = vmatpush.msra.mxu1 %v98_v52  ;;  %290 = vmatpush.msra.mxu3 %v132_v9  ;;  %v154_v27 = vld [vmem:[#allocation2 + $0x240] sm:$0xff]  ;;  %v169_v31 = vld [vmem:[#allocation2 + $0x2b8] sm:$0xff]  ;;  %v152_v33 = vld [vmem:[#allocation2 + $0x230] sm:$0xff] }
  0x2f   :  { %297 = vmatpush.msrb.mxu0 %v161_v58  ;;  %271 = vmatpush.msra.mxu2 %v115_v8  ;;  %v170_v28 = vld [vmem:[#allocation2 + $0x2c0] sm:$0xff]  ;;  %v168_v34 = vld [vmem:[#allocation2 + $0x2b0] sm:$0xff]  ;;  %v151_v36 = vld [vmem:[#allocation2 + $0x228] sm:$0xff] }
  0x30   :  { %317 = vmatpush.msrb.mxu1 %v177_v59  ;;  %291 = vmatpush.msra.mxu3 %v131_v14  ;;  %v350_v35 = vld [vmem:[#allocation5 + $0x60] sm:$0xff]  ;;  %v167_v37 = vld [vmem:[#allocation2 + $0x2a8] sm:$0xff]  ;;  %v349_v38 = vld [vmem:[#allocation5 + $0x58] sm:$0xff] }
  0x31   :  { %298 = vmatpush.msrb.mxu0 %v160_v63  ;;  %272 = vmatpush.msra.mxu2 %v114_v13  ;;  %v150_v39 = vld [vmem:[#allocation2 + $0x220] sm:$0xff]  ;;  %v348_v41 = vld [vmem:[#allocation5 + $0x50] sm:$0xff]  ;;  %v149_v42 = vld [vmem:[#allocation2 + $0x218] sm:$0xff] }
  0x32   :  { %318 = vmatpush.msrb.mxu1 %v176_v1  ;;  %273 = vmatmul.f32.vlgmr.msra.gmra.mxu2 %v207_v20  ;;  %v166_v40 = vld [vmem:[#allocation2 + $0x2a0] sm:$0xff]  ;;  %v165_v43 = vld [vmem:[#allocation2 + $0x298] sm:$0xff]  ;;  %v347_v44 = vld [vmem:[#allocation5 + $0x48] sm:$0xff] }
  0x33   :  { %299 = vmatpush.msrb.mxu0 %v159_v0  ;;  %292 = vmatpush.msra.mxu3 %v130_v17  ;;  %v148_v45 = vld [vmem:[#allocation2 + $0x210] sm:$0xff]  ;;  %v346_v47 = vld [vmem:[#allocation5 + $0x40] sm:$0xff]  ;;  %v147_v48 = vld [vmem:[#allocation2 + $0x208] sm:$0xff] }
  0x34   :  { %319 = vmatpush.msrb.mxu1 %v175_v2  ;;  %233 = vmatmul.f32.vlgmr.msra.gmra.mxu0 %v205_v21  ;;  %v164_v46 = vld [vmem:[#allocation2 + $0x290] sm:$0xff]  ;;  %v163_v49 = vld [vmem:[#allocation2 + $0x288] sm:$0xff]  ;;  %v146_v50 = vld [vmem:[#allocation2 + $0x200] sm:$0xff] }
  0x35   :  { %300 = vmatpush.msrb.mxu0 %v158_v11  ;;  %293 = vmatmul.f32.vlgmr.msra.gmra.mxu3 %v208_v22  ;;  %v162_v51 = vld [vmem:[#allocation2 + $0x280] sm:$0xff]  ;;  %v209_v52 = vld.sshfl [vmem:[#allocation1 + $0x20] sm:$0xff pattern:$0x73625140]  ;;  %v344_v55 = vld [vmem:[#allocation5 + $0x30] sm:$0xff] }
  0x36   :  { %320 = vmatpush.msrb.mxu1 %v174_v12  ;;  %358 = vmatpush.msrb.mxu2 %v353_v26  ;;  %v210_v53 = vld.sshfl [vmem:[#allocation1 + $0x28] sm:$0xff pattern:$0x73625140]  ;;  %v345_v54 = vld [vmem:[#allocation5 + $0x38] sm:$0xff]  ;;  %v343_v56 = vld [vmem:[#allocation5 + $0x28] sm:$0xff] }
  0x37   :  { %301 = vmatpush.msrb.mxu0 %v157_v15  ;;  %253 = vmatmul.f32.vlgmr.msra.gmra.mxu1 %v206_v25  ;;  %v342_v57 = vld [vmem:[#allocation5 + $0x20] sm:$0xff]  ;;  %v341_v58 = vld [vmem:[#allocation5 + $0x18] sm:$0xff]  ;;  %v340_v59 = vld [vmem:[#allocation5 + $0x10] sm:$0xff] }
  0x38   :  { %321 = vmatpush.msrb.mxu1 %v173_v16  ;;  %359 = vmatpush.msrb.mxu2 %v352_v29  ;;  %v339_v60 = vld [vmem:[#allocation5 + $0x8] sm:$0xff]  ;;  %v338_v61 = vld [vmem:[#allocation5] sm:$0xff]  ;;  %v394_v62 = vld [vmem:[#allocation7 + $0x78] sm:$0xff] }
  0x39   :  { %302 = vmatpush.msrb.mxu0 %v156_v18  ;;  %v393_v63 = vld [vmem:[#allocation7 + $0x70] sm:$0xff]  ;;  %399 = vmatpush.msrb.mxu3 %v394_v62  ;;  %v392_v0 = vld [vmem:[#allocation7 + $0x68] sm:$0xff]  ;;  %v391_v1 = vld [vmem:[#allocation7 + $0x60] sm:$0xff] }
  0x3a   :  { %322 = vmatpush.msrb.mxu1 %v172_v19  ;;  %360 = vmatpush.msrb.mxu2 %v351_v32  ;;  %v448_v2 = vld [vmem:[%s648_s2] ss:$0 sm:$0xff]  ;;  %v389_v5 = vld [vmem:[#allocation7 + $0x50] sm:$0xff]  ;;  %v388_v7 = vld [vmem:[#allocation7 + $0x48] sm:$0xff] }
  0x3b   :  { %303 = vmatpush.msrb.mxu0 %v155_v23  ;;  %400 = vmatpush.msrb.mxu3 %v393_v63  ;;  %v390_v3 = vld [vmem:[#allocation7 + $0x58] sm:$0xff]  ;;  %v387_v9 = vld [vmem:[#allocation7 + $0x40] sm:$0xff]  ;;  %v385_v13 = vld [vmem:[#allocation7 + $0x30] sm:$0xff] }
  0x3c   :  { %323 = vmatpush.msrb.mxu1 %v171_v24  ;;  %361 = vmatpush.msrb.mxu2 %v350_v35  ;;  %v386_v11 = vld [vmem:[#allocation7 + $0x38] sm:$0xff]  ;;  %v384_v15 = vld [vmem:[#allocation7 + $0x28] sm:$0xff]  ;;  %v383_v17 = vld [vmem:[#allocation7 + $0x20] sm:$0xff] }
  0x3d   :  { %304 = vmatpush.msrb.mxu0 %v154_v27  ;;  %401 = vmatpush.msrb.mxu3 %v392_v0  ;;  %v382_v19 = vld [vmem:[#allocation7 + $0x18] sm:$0xff]  ;;  %v381_v25 = vld [vmem:[#allocation7 + $0x10] sm:$0xff]  ;;  %v380_v26 = vld [vmem:[#allocation7 + $0x8] sm:$0xff] }
  0x3e   :  { %324 = vmatpush.msrb.mxu1 %v170_v28  ;;  %362 = vmatpush.msrb.mxu2 %v349_v38  ;;  %v379_v27 = vld [vmem:[#allocation7] sm:$0xff]  ;;  %v449_v28 = vld [vmem:[%s650_s4] ss:$0 sm:$0xff] }
  0x3f   :  { %305 = vmatpush.msrb.mxu0 %v153_v30  ;;  %402 = vmatpush.msrb.mxu3 %v391_v1  ;;  %v450_v32 = vld [vmem:[%s652_s6] ss:$0 sm:$0xff] }
  0x40   :  { %325 = vmatpush.msrb.mxu1 %v169_v31  ;;  %363 = vmatpush.msrb.mxu2 %v348_v41 }
  0x41   :  { %306 = vmatpush.msrb.mxu0 %v152_v33  ;;  %403 = vmatpush.msrb.mxu3 %v390_v3 }
  0x42   :  { %326 = vmatpush.msrb.mxu1 %v168_v34  ;;  %364 = vmatpush.msrb.mxu2 %v347_v44 }
  0x43   :  { %307 = vmatpush.msrb.mxu0 %v151_v36  ;;  %404 = vmatpush.msrb.mxu3 %v389_v5 }
  0x44   :  { %327 = vmatpush.msrb.mxu1 %v167_v37  ;;  %365 = vmatpush.msrb.mxu2 %v346_v47 }
  0x45   :  { %308 = vmatpush.msrb.mxu0 %v150_v39  ;;  %405 = vmatpush.msrb.mxu3 %v388_v7 }
  0x46   :  { %328 = vmatpush.msrb.mxu1 %v166_v40  ;;  %366 = vmatpush.msrb.mxu2 %v345_v54 }
  0x47   :  { %309 = vmatpush.msrb.mxu0 %v149_v42  ;;  %406 = vmatpush.msrb.mxu3 %v387_v9 }
  0x48   :  { %329 = vmatpush.msrb.mxu1 %v165_v43  ;;  %367 = vmatpush.msrb.mxu2 %v344_v55 }
  0x49   :  { %310 = vmatpush.msrb.mxu0 %v148_v45  ;;  %407 = vmatpush.msrb.mxu3 %v386_v11 }
  0x4a   :  { %330 = vmatpush.msrb.mxu1 %v164_v46  ;;  %368 = vmatpush.msrb.mxu2 %v343_v56 }
  0x4b   :  { %311 = vmatpush.msrb.mxu0 %v147_v48  ;;  %408 = vmatpush.msrb.mxu3 %v385_v13 }
  0x4c   :  { %331 = vmatpush.msrb.mxu1 %v163_v49  ;;  %369 = vmatpush.msrb.mxu2 %v342_v57 }
  0x4d   :  { %312 = vmatpush.msrb.mxu0 %v146_v50  ;;  %409 = vmatpush.msrb.mxu3 %v384_v15 }
  0x4e   :  { %332 = vmatpush.msrb.mxu1 %v162_v51  ;;  %313 = vmatmul.f32.vlgmr.msrb.gmra.mxu0 %v209_v52 }
  0x4f   :  { %333 = vmatmul.f32.vlgmr.msrb.gmra.mxu1 %v210_v53  ;;  %370 = vmatpush.msrb.mxu2 %v341_v58 }
  0x50   :  { %410 = vmatpush.msrb.mxu3 %v383_v17 }
  0x51   :  { %371 = vmatpush.msrb.mxu2 %v340_v59 }
  0x52   :  { %411 = vmatpush.msrb.mxu3 %v382_v19 }
  0x53   :  { %372 = vmatpush.msrb.mxu2 %v339_v60 }
  0x54   :  { %412 = vmatpush.msrb.mxu3 %v381_v25 }
  0x55   :  { %373 = vmatpush.msrb.mxu2 %v338_v61 }
  0x56   :  { %413 = vmatpush.msrb.mxu3 %v380_v26 }
  0x58   :  { %414 = vmatpush.msrb.mxu3 %v379_v27 }
  0xb1   :  { %v234_v4 = vpop.f32.mrf.mxu0 }
  0xb2   :  { %v235_v6 = vadd.f32 %v448_v2, %v234_v4 }
  0xb4   :  { %v254_v8 = vpop.f32.mrf.mxu1 }
  0xb5   :  { %v255_v10 = vadd.f32 %v254_v8, %v235_v6  ;;  %v274_v12 = vpop.f32.mrf.mxu2 }
  0xb7   :  { %v275_v14 = vadd.f32 %v274_v12, %v255_v10 }
  0xb8   :  { %v294_v16 = vpop.f32.mrf.mxu3 }
  0xb9   :  { %v295_v18 = vadd.f32 %v294_v16, %v275_v14 }
  0xcb   :  { %v314_v20 = vpop.f32.mrf.mxu0 }
  0xcc   :  { %v334_v21 = vpop.f32.mrf.mxu1  ;;  %v315_v22 = vadd.f32 %v314_v20, %v295_v18 }
  0xce   :  { %v335_v23 = vadd.f32 %v334_v21, %v315_v22 }
  0xd0   :  { %v337_v24 = vmax.f32 %v335_v23, 0.0 }
  0xd2   :  { %374 = vmatmul.f32.vlgmr.msrb.gmra.mxu2 %v337_v24 }
 0x155   :  { %v375_v29 = vpop.f32.mrf.mxu2 }
 0x156   :  { %v376_v30 = vadd.f32 %v449_v28, %v375_v29 }
 0x158   :  { %v378_v31 = vmax.f32 %v376_v30, 0.0 }
 0x15a   :  { %415 = vmatmul.f32.vlgmr.msrb.gmra.mxu3 %v378_v31 }
 0x1dd   :  { %v416_v33 = vpop.f32.mrf.mxu3 }
 0x1de   :  { %v417_v34 = vadd.f32 %v450_v32, %v416_v33 }
 0x1e0   :  { %419 = vst [vmem:[#allocation8] sm:$0xff] %v417_v34 }
 0x1e1   :  { %423 = vsyncadd [#allocation4], 96  ;;  %s426_s14 = sshll.u32 %s653_s7, 4  ;;  %s558_s15 = smov [#allocation8]   ;;  %s427_s14 = int_to_ptr.hbm [resolvable:$true] %s426_s14 }
 0x1e2   :  { %s424_s3 = sshll.u32 %s558_s15, 4  ;;  %s559_s4 = smov 32   ;;  %s425_s3 = int_to_ptr.vmem [resolvable:$true] %s424_s3 }
 0x1e3   :  { %s560_s16 = smov 2  }
 0x1e4   :  { %432 = dma.vmem_to_hbm [thread:$0]  %s425_s3, 32, %s427_s14, [#allocation4], %s559_s4, %s559_s4, %s560_s16  }
 0x1e5   :  { %551 = dma.done.wait [#allocation4], 128  }
 0x1e6   :  { %552 = vsyncadd [#allocation4], 4294967168 }
 0x1e7   :  { %437 = vsyncpa [#allocation3], 1 }
 0x1e8   :  { %438 = vsyncpa [#allocation6], 1 }
 0x1e9   :  { %439 = vsyncpa [#allocation4], 1 }

</bundles_post_ra>
